<compile_context>
chip_gen: v5e
topology: v5e:2x2
jax: 0.10.0
libtpu: 0.0.40
codegen_flags: <defaults>
</compile_context>

<pallas_src>
import functools

import numpy as np
import jax
import jax.numpy as jnp
from jax.experimental import pallas as pl
from jax.experimental.pallas import tpu as pltpu


def _round_up(n, m):
    return ((n + m - 1) // m) * m


def rnncell1_kernel(xk_ref, w_ref, b_ref, o_ref, *, nonlin):
    # Single MXU matmul on pre-transposed, lane-dense (N = multiple of 128)
    # weight; bias add + nonlinearity stay in f32 (VPU/EUP).
    acc = jnp.dot(xk_ref[...], w_ref[...], preferred_element_type=jnp.float32)
    h = acc + b_ref[...]
    if nonlin == "tanh":
        h = jnp.tanh(h)
    elif nonlin == "relu":
        h = jnp.maximum(h, 0.0)
    elif nonlin == "sigmoid":
        h = jax.nn.sigmoid(h)
    # TODO(synk): 'modrelu' (learnable per-unit alpha) not implemented.
    o_ref[...] = h.astype(o_ref.dtype)


def _fused_linear_nonlin(xk, w, b2, *, bm, out_dtype, nonlin):
    """tanh(xk @ w + b2) via one Pallas call.

    xk: (batch_p, K)  matmul dtype (bf16 or f32), batch_p % bm == 0
    w : (K, hid_p)    same dtype as xk, grid-invariant
    b2: (1, hid_p)    f32, grid-invariant
    """
    batch_p, k = xk.shape
    hid_p = w.shape[1]
    grid = (batch_p // bm,)
    return pl.pallas_call(
        functools.partial(rnncell1_kernel, nonlin=nonlin),
        out_shape=jax.ShapeDtypeStruct((batch_p, hid_p), out_dtype),
        grid_spec=pltpu.PrefetchScalarGridSpec(
            num_scalar_prefetch=0,
            grid=grid,
            in_specs=[
                pl.BlockSpec((bm, k), lambda i: (i, 0)),
                pl.BlockSpec((k, hid_p), lambda i: (0, 0)),   # grid-invariant
                pl.BlockSpec((1, hid_p), lambda i: (0, 0)),   # grid-invariant
            ],
            out_specs=pl.BlockSpec((bm, hid_p), lambda i: (i, 0)),
        ),
        compiler_params=pltpu.CompilerParams(
            dimension_semantics=("parallel",)),
    )(xk, w, b2)


def rnncell1_forward(x, u_w, u_b, v_w, hidden=None, *,
                     nonlin="tanh", use_bf16=True):
    """RNNCell1.forward.  x:(B,inp), u_w:(hid,inp), u_b:(hid,), v_w:(hid,hid)."""
    batch, inp = x.shape
    hid = u_w.shape[0]
    out_dtype = x.dtype

    # Lane-dense output / weight N dim.
    hid_p = _round_up(hid, 128)

    # Batch tiling: <=128 rows -> single sublane-aligned tile; larger batches
    # split into 128-row tiles on a 'parallel' grid axis (v7x megacore).
    bm = 128
    if batch <= bm:
        batch_p = _round_up(batch, 8)
        bm = batch_p
    else:
        batch_p = _round_up(batch, bm)

    mm_dtype = jnp.bfloat16 if use_bf16 else x.dtype

    # Static weight prep (pre-transpose + pad N to 128-multiple).
    u_wT = jnp.pad(u_w.T.astype(mm_dtype), ((0, 0), (0, hid_p - hid)))
    b2 = jnp.pad(u_b.astype(jnp.float32).reshape(1, hid),
                 ((0, 0), (0, hid_p - hid)))

    if hidden is None:
        # hidden == 0  =>  V(hidden) == 0: skip the V matmul and the
        # zeros-hidden DMA entirely.
        xk = jnp.pad(x.astype(mm_dtype), ((0, batch_p - batch), (0, 0)))
        w = u_wT
    else:
        # Fuse U and V into one matmul: [x | h] @ [U^T ; V^T].
        v_wT = jnp.pad(v_w.T.astype(mm_dtype), ((0, 0), (0, hid_p - hid)))
        w = jnp.concatenate([u_wT, v_wT], axis=0)          # (inp+hid, hid_p)
        xh = jnp.concatenate(
            [x.astype(mm_dtype), hidden.astype(mm_dtype)], axis=1)
        xk = jnp.pad(xh, ((0, batch_p - batch), (0, 0)))

    h_p = _fused_linear_nonlin(xk, w, b2, bm=bm, out_dtype=out_dtype,
                               nonlin=nonlin)
    return h_p[:batch, :hid]


def _henaff_like_orthogonal(hid_size, seed=0):
    """Deterministic stand-in for expm(henaff_init): skew-symmetric A ->
    expm(A) is orthogonal (mirrors RNNCell1.reset_parameters for V)."""
    rng = np.random.RandomState(seed)
    thetas = rng.uniform(-np.pi, np.pi, size=(hid_size, hid_size))
    a = np.triu(thetas, k=1)
    a = a - a.T
    v = jax.scipy.linalg.expm(jnp.asarray(a, dtype=jnp.float32))
    return v.astype(jnp.float32)


def _xavier_normal(key, fan_out, fan_in):
    std = float(np.sqrt(2.0 / (fan_in + fan_out)))
    return std * jax.random.normal(key, (fan_out, fan_in), dtype=jnp.float32)


if __name__ == "__main__":
    inp_size = 16
    hid_size = 32
    batch = 8

    key = jax.random.PRNGKey(0)
    kx, ku, kb, kh = jax.random.split(key, 4)

    # Parameters (deterministic, mirrors RNNCell1.__init__ / reset_parameters).
    u_w = _xavier_normal(ku, hid_size, inp_size)             # U.weight (hid,inp)
    u_b = 0.01 * jax.random.normal(kb, (hid_size,), dtype=jnp.float32)
    v_w = _henaff_like_orthogonal(hid_size, seed=0)          # V.weight (hid,hid)

    x = jax.random.normal(kx, (batch, inp_size), dtype=jnp.float32)

    # Path 1: hidden=None (module default) -- V path skipped in the kernel.
    h = rnncell1_forward(x, u_w, u_b, v_w, hidden=None)
    h = jax.block_until_ready(h)
    ref = jnp.tanh(x @ u_w.T + u_b)                          # V(0) == 0
    np.testing.assert_allclose(np.asarray(h), np.asarray(ref),
                               rtol=3e-2, atol=3e-2)

    # Path 2: explicit hidden -- fused single-matmul kernel.
    hidden = 0.5 * jax.random.normal(kh, (batch, hid_size), dtype=jnp.float32)
    h2 = rnncell1_forward(x, u_w, u_b, v_w, hidden=hidden)
    h2 = jax.block_until_ready(h2)
    ref2 = jnp.tanh(x @ u_w.T + u_b + hidden @ v_w.T)
    np.testing.assert_allclose(np.asarray(h2), np.asarray(ref2),
                               rtol=3e-2, atol=3e-2)

    print("KERNEL_OK")
</pallas_src>

<mosaic_0001>
module attributes {stable_mosaic.version = 11 : i64} {
  func.func @rnncell1_kernel(%arg0: i32, %arg1: memref<8x16xbf16, #tpu.memory_space<vmem>>, %arg2: memref<16x128xbf16, #tpu.memory_space<vmem>>, %arg3: memref<1x128xf32, #tpu.memory_space<vmem>>, %arg4: memref<8x128xf32, #tpu.memory_space<vmem>>) attributes {dimension_semantics = [#tpu.dimension_semantics<parallel>], iteration_bounds = array<i64: 1>, scalar_prefetch = 0 : i64, scratch_operands = 0 : i64, tpu.core_type = #tpu.core_type<tc>, window_params = [{transform_indices = @transform_0, window_bounds = array<i64: 8, 16>}, {pipeline_mode = #tpu.pipeline_mode<synchronous>, transform_indices = @transform_1, window_bounds = array<i64: 16, 128>}, {pipeline_mode = #tpu.pipeline_mode<synchronous>, transform_indices = @transform_2, window_bounds = array<i64: 1, 128>}, {transform_indices = @transform_3, window_bounds = array<i64: 8, 128>}]} {
    %c0 = arith.constant 0 : index
    %c0_0 = arith.constant 0 : index
    %0 = vector.load %arg1[%c0, %c0_0] : memref<8x16xbf16, #tpu.memory_space<vmem>>, vector<8x16xbf16>
    %c0_1 = arith.constant 0 : index
    %c0_2 = arith.constant 0 : index
    %1 = vector.load %arg2[%c0_1, %c0_2] : memref<16x128xbf16, #tpu.memory_space<vmem>>, vector<16x128xbf16>
    %cst = arith.constant dense<0.000000e+00> : vector<8x128xf32>
    %2 = tpu.matmul %0, %1, %cst {dimension_numbers = #tpu.dot_dimension_numbers<[1], [0], [0], [1], [0, 0, 1, 1], [], []>} : vector<8x16xbf16>, vector<16x128xbf16>, vector<8x128xf32> -> vector<8x128xf32>
    %c0_3 = arith.constant 0 : index
    %c0_4 = arith.constant 0 : index
    %3 = vector.load %arg3[%c0_3, %c0_4] : memref<1x128xf32, #tpu.memory_space<vmem>>, vector<1x128xf32>
    %4 = vector.broadcast %3 : vector<1x128xf32> to vector<8x128xf32>
    %5 = arith.addf %2, %4 : vector<8x128xf32>
    %6 = math.tanh %5 : vector<8x128xf32>
    %c0_5 = arith.constant 0 : index
    %c0_6 = arith.constant 0 : index
    %7 = vector.load %arg4[%c0_5, %c0_6] : memref<8x128xf32, #tpu.memory_space<vmem>>, vector<8x128xf32>
    tpu.vector_store %arg4[%c0_5, %c0_6], %6 {strides = array<i32>} : memref<8x128xf32, #tpu.memory_space<vmem>>, vector<8x128xf32>,
    return
  }
  func.func @transform_0(%arg0: i32) -> (i32, i32) {
    %c0_i32 = arith.constant 0 : i32
    %c0_i32_0 = arith.constant 0 : i32
    return %arg0, %c0_i32 : i32, i32
  }
  func.func @transform_1(%arg0: i32) -> (i32, i32) {
    %c0_i32 = arith.constant 0 : i32
    %c0_i32_0 = arith.constant 0 : i32
    %c0_i32_1 = arith.constant 0 : i32
    return %c0_i32, %c0_i32_0 : i32, i32
  }
  func.func @transform_2(%arg0: i32) -> (i32, i32) {
    %c0_i32 = arith.constant 0 : i32
    %c0_i32_0 = arith.constant 0 : i32
    %c0_i32_1 = arith.constant 0 : i32
    return %c0_i32, %c0_i32_0 : i32, i32
  }
  func.func @transform_3(%arg0: i32) -> (i32, i32) {
    %c0_i32 = arith.constant 0 : i32
    %c0_i32_0 = arith.constant 0 : i32
    return %arg0, %c0_i32 : i32, i32
  }
}

</mosaic_0001>

<bundles_post_ra>
// kernel: tpu_custom_call.1
= control target key start
LH: loop header
LB: loop body
LE: loop exit
PB: predicated region body
PF: predicated region fallthrough
CT: control target
= control target key end

     0   :  { %8 = vsyncpa [#allocation3], 0  ;;  %s225_s0 = inlined_call_operand.hbm [shape: bf16[8,16], index: 0, kind: input, shape index: {}]   ;;  %s226_s1 = inlined_call_operand.hbm [shape: bf16[16,128], index: 1, kind: input, shape index: {}]   ;;  %s227_s2 = inlined_call_operand.vmem [shape: f32[1,128], index: 2, kind: input, shape index: {}]   ;;  %s228_s3 = inlined_call_operand.hbm [shape: f32[8,128], index: 3, kind: output, shape index: {}]  }
   0x1   :  { %9 = vsyncpa [#allocation6], 0 }
   0x2   :  { %10 = vsyncpa [#allocation4], 0  ;;  %s16_s14 = sshll.u32 %s225_s0, 4  ;;  %s188_s15 = smov [#allocation2]   ;;  %s17_s14 = int_to_ptr.hbm [resolvable:$true] %s16_s14 }
   0x3   :  { %s18_s16 = sshll.u32 %s188_s15, 4  ;;  %s26_s19 = sshll.u32 %s226_s1, 4  ;;  %s19_s16 = int_to_ptr.vmem [resolvable:$true] %s18_s16  ;;  %s27_s19 = int_to_ptr.hbm [resolvable:$true] %s26_s19 }
   0x4   :  { %21 = dma.hbm_to_vmem [thread:$0]  %s17_s14, 64, %s19_s16, [#allocation3]  }
   0x5   :  { %s189_s20 = smov [#allocation5]   ;;  %s190_s22 = smov 64  }
   0x6   :  { %s28_s21 = sshll.u32 %s189_s20, 4  ;;  %s191_s23 = smov 4   ;;  %s29_s21 = int_to_ptr.vmem [resolvable:$true] %s28_s21 }
   0x7   :  { %34 = dma.hbm_to_vmem [thread:$0]  %s27_s19, 128, %s29_s21, [#allocation6], %s190_s22, %s190_s22, %s191_s23  }
   0x8   :  { %182 = dma.done.wait [#allocation3], 64  }
   0x9   :  { %183 = vsyncadd [#allocation3], 4294967232 }
   0xa   :  { %184 = dma.done.wait [#allocation6], 128  }
   0xb   :  { %185 = vsyncadd [#allocation6], 4294967168  ;;  %v101_v0 = vld [vmem:[#allocation5] sm:$0xff]  ;;  %v46_v1 = vld [vmem:[#allocation2] sm:$0xf]  ;;  %vm59_vm0 = vcmask 130048  }
   0xc   :  { %70 = vmatpush.bf16.msra.mxu0 %v101_v0  ;;  %v107_v2 = vld [vmem:[%s227_s2] ss:$0 sm:$0xff]  ;;  %s192_s1 = smov [#allocation7]   ;;  %s85_s28 = sshll.u32 %s228_s3, 4  ;;  %s86_s28 = int_to_ptr.hbm [resolvable:$true] %s85_s28 }
   0xd   :  { %s83_s25 = sshll.u32 %s192_s1, 4  ;;  %s84_s25 = int_to_ptr.vmem [resolvable:$true] %s83_s25 }
   0xf   :  { %100 = vmatmul.msk.bf16.vlgmr.msra.gmra.mxu0 %vm59_vm0, %v46_v1 }
  0x8c   :  { %v72_v3 = vpop.f32.mrf.mxu0 }
  0x8d   :  { %v73_v4 = vadd.f32 %v107_v2, %v72_v3 }
  0x8f   :  { %108 = vtanh.f32 %v73_v4 }
  0x94   :  { %v74_v5 = vpop.f32.mrf.mxu0 }
  0x95   :  { %v109_v6 = vpop.eup %108 }
  0x96   :  { %77 = vst [vmem:[#allocation7] sm:$0xff] %v109_v6 }
  0x97   :  { %88 = dma.vmem_to_hbm [thread:$0]  %s84_s25, 128, %s86_s28, [#allocation4]  }
  0x98   :  { %186 = dma.done.wait [#allocation4], 128  }
  0x99   :  { %187 = vsyncadd [#allocation4], 4294967168 }
  0x9a   :  { %93 = vsyncpa [#allocation3], 1 }
  0x9b   :  { %94 = vsyncpa [#allocation6], 1 }
  0x9c   :  { %95 = vsyncpa [#allocation4], 1 }

</bundles_post_ra>
